<compile_context>
chip_gen: v7x
topology: tpu7x:2x2x1
jax: 0.10.0
libtpu: 0.0.40
codegen_flags: <defaults>
</compile_context>

<pallas_src>
import numpy as np
import jax
import jax.numpy as jnp
from jax.experimental import pallas as pl
from jax.experimental.pallas import tpu as pltpu

KERNEL_SIZE = 24
IN_FEATURES = 768
POOLED = IN_FEATURES // KERNEL_SIZE  # 32
OUT_FEATURES = 3

# Hoisted constant pooling matrix: P[k, m] = 1/24 if k // 24 == m else 0,
# so x @ P == AvgPool1d(kernel=24, stride=24)(x).
_k_idx = np.arange(IN_FEATURES) // KERNEL_SIZE
_POOL_MAT = jnp.asarray(
    (_k_idx[:, None] == np.arange(POOLED)[None, :]).astype(np.float32)
    / np.float32(KERNEL_SIZE)
)  # (768, 32)


def net_kernel(x_ref, pool_ref, w_ref, b_ref, o_ref):
    # AvgPool1d(24) as a matmul with the constant pooling matrix (MXU).
    pooled = jnp.dot(x_ref[...], pool_ref[...],
                     preferred_element_type=jnp.float32)         # (TM, 32)
    h = jnp.maximum(pooled, 0.0)                                  # relu (VPU)
    # Linear(32 -> 3): h @ W + b  (w stored as (32, 3)).
    o_ref[...] = jnp.dot(h, w_ref[...],
                         preferred_element_type=jnp.float32) + b_ref[...]


def _round_up(n, m):
    return ((n + m - 1) // m) * m


def net_forward(x, w, b, *, tm=1024):
    """x: (B, 768) f32, w: (32, 3) f32, b: (1, 3) f32 -> (B, 3) f32."""
    B = x.shape[0]
    # Keep the batch tile sublane-aligned (multiple of 8) and no bigger than
    # needed; big tiles amortize the per-grid-step overhead (HBM-bound kernel).
    tm = min(tm, _round_up(B, 8))
    grid = (pl.cdiv(B, tm),)

    return pl.pallas_call(
        net_kernel,
        out_shape=jax.ShapeDtypeStruct((B, OUT_FEATURES), jnp.float32),
        grid=grid,
        in_specs=[
            pl.BlockSpec((tm, IN_FEATURES), lambda i: (i, 0)),        # x tile
            pl.BlockSpec((IN_FEATURES, POOLED), lambda i: (0, 0)),    # pool mat
            pl.BlockSpec((POOLED, OUT_FEATURES), lambda i: (0, 0)),   # fc weight
            pl.BlockSpec((1, OUT_FEATURES), lambda i: (0, 0)),        # fc bias
        ],
        out_specs=pl.BlockSpec((tm, OUT_FEATURES), lambda i: (i, 0)),
        compiler_params=pltpu.CompilerParams(
            dimension_semantics=("parallel",),
            vmem_limit_bytes=32 << 20,
        ),
    )(x, _POOL_MAT, w, b)


def _reference(x, w, b):
    pooled = jnp.mean(x.reshape(x.shape[0], POOLED, KERNEL_SIZE), axis=-1)
    return jnp.maximum(pooled, 0.0) @ w + b


if __name__ == "__main__":
    key = jax.random.PRNGKey(0)
    kx, kw, kb, kx2 = jax.random.split(key, 4)

    # Deterministic parameters (shapes from nn.Linear(32, 3)).
    bound = 1.0 / float(np.sqrt(POOLED))
    w = jax.random.uniform(kw, (POOLED, OUT_FEATURES), jnp.float32, -bound, bound)
    b = jax.random.uniform(kb, (1, OUT_FEATURES), jnp.float32, -bound, bound)

    # Small batch (single, partial tile).
    B = 2
    x = jax.random.normal(kx, (B, IN_FEATURES), dtype=jnp.float32)
    out = jax.block_until_ready(net_forward(x, w, b))
    ref = _reference(x, w, b)
    assert out.shape == (B, OUT_FEATURES)
    assert jnp.allclose(out, ref, atol=1e-5, rtol=1e-5)

    # Multi-tile batch with a ragged last tile (exercises the gridded path).
    B2 = 1040
    x2 = jax.random.normal(kx2, (B2, IN_FEATURES), dtype=jnp.float32)
    out2 = jax.block_until_ready(net_forward(x2, w, b))
    ref2 = _reference(x2, w, b)
    assert out2.shape == (B2, OUT_FEATURES)
    assert jnp.allclose(out2, ref2, atol=1e-5, rtol=1e-5)

    print("KERNEL_OK")
</pallas_src>

<mosaic_0001>
module attributes {stable_mosaic.version = 11 : i64} {
  func.func @net_kernel(%arg0: i32, %arg1: memref<8x768xf32, #tpu.memory_space<vmem>>, %arg2: memref<768x32xf32, #tpu.memory_space<vmem>>, %arg3: memref<32x3xf32, #tpu.memory_space<vmem>>, %arg4: memref<1x3xf32, #tpu.memory_space<vmem>>, %arg5: memref<8x3xf32, #tpu.memory_space<vmem>>) attributes {dimension_semantics = [#tpu.dimension_semantics<parallel>], iteration_bounds = array<i64: 1>, scalar_prefetch = 0 : i64, scratch_operands = 0 : i64, tpu.core_type = #tpu.core_type<tc>, window_params = [{transform_indices = @transform_0, window_bounds = array<i64: 8, 768>}, {pipeline_mode = #tpu.pipeline_mode<synchronous>, transform_indices = @transform_1, window_bounds = array<i64: 768, 32>}, {pipeline_mode = #tpu.pipeline_mode<synchronous>, transform_indices = @transform_2, window_bounds = array<i64: 32, 3>}, {pipeline_mode = #tpu.pipeline_mode<synchronous>, transform_indices = @transform_3, window_bounds = array<i64: 1, 3>}, {transform_indices = @transform_4, window_bounds = array<i64: 8, 3>}]} {
    %c0 = arith.constant 0 : index
    %c0_0 = arith.constant 0 : index
    %0 = vector.load %arg1[%c0, %c0_0] : memref<8x768xf32, #tpu.memory_space<vmem>>, vector<8x768xf32>
    %c0_1 = arith.constant 0 : index
    %c0_2 = arith.constant 0 : index
    %1 = vector.load %arg2[%c0_1, %c0_2] : memref<768x32xf32, #tpu.memory_space<vmem>>, vector<768x32xf32>
    %cst = arith.constant dense<0.000000e+00> : vector<8x32xf32>
    %2 = tpu.matmul %0, %1, %cst {dimension_numbers = #tpu.dot_dimension_numbers<[1], [0], [0], [1], [0, 0, 1, 1], [], []>} : vector<8x768xf32>, vector<768x32xf32>, vector<8x32xf32> -> vector<8x32xf32>
    %cst_3 = arith.constant 0.000000e+00 : f32
    %3 = vector.broadcast %cst_3 : f32 to vector<8x32xf32>
    %4 = arith.maximumf %2, %3 : vector<8x32xf32>
    %c0_4 = arith.constant 0 : index
    %c0_5 = arith.constant 0 : index
    %5 = vector.load %arg3[%c0_4, %c0_5] : memref<32x3xf32, #tpu.memory_space<vmem>>, vector<32x3xf32>
    %cst_6 = arith.constant dense<0.000000e+00> : vector<8x3xf32>
    %6 = tpu.matmul %4, %5, %cst_6 {dimension_numbers = #tpu.dot_dimension_numbers<[1], [0], [0], [1], [0, 0, 1, 1], [], []>} : vector<8x32xf32>, vector<32x3xf32>, vector<8x3xf32> -> vector<8x3xf32>
    %c0_7 = arith.constant 0 : index
    %c0_8 = arith.constant 0 : index
    %7 = vector.load %arg4[%c0_7, %c0_8] : memref<1x3xf32, #tpu.memory_space<vmem>>, vector<1x3xf32>
    %8 = vector.broadcast %7 : vector<1x3xf32> to vector<8x3xf32>
    %9 = arith.addf %6, %8 : vector<8x3xf32>
    %c0_9 = arith.constant 0 : index
    %c0_10 = arith.constant 0 : index
    %10 = vector.load %arg5[%c0_9, %c0_10] : memref<8x3xf32, #tpu.memory_space<vmem>>, vector<8x3xf32>
    tpu.vector_store %arg5[%c0_9, %c0_10], %9 {strides = array<i32>} : memref<8x3xf32, #tpu.memory_space<vmem>>, vector<8x3xf32>,
    return
  }
  func.func @transform_0(%arg0: i32) -> (i32, i32) {
    %c0_i32 = arith.constant 0 : i32
    %c0_i32_0 = arith.constant 0 : i32
    return %arg0, %c0_i32 : i32, i32
  }
  func.func @transform_1(%arg0: i32) -> (i32, i32) {
    %c0_i32 = arith.constant 0 : i32
    %c0_i32_0 = arith.constant 0 : i32
    %c0_i32_1 = arith.constant 0 : i32
    return %c0_i32, %c0_i32_0 : i32, i32
  }
  func.func @transform_2(%arg0: i32) -> (i32, i32) {
    %c0_i32 = arith.constant 0 : i32
    %c0_i32_0 = arith.constant 0 : i32
    %c0_i32_1 = arith.constant 0 : i32
    return %c0_i32, %c0_i32_0 : i32, i32
  }
  func.func @transform_3(%arg0: i32) -> (i32, i32) {
    %c0_i32 = arith.constant 0 : i32
    %c0_i32_0 = arith.constant 0 : i32
    %c0_i32_1 = arith.constant 0 : i32
    return %c0_i32, %c0_i32_0 : i32, i32
  }
  func.func @transform_4(%arg0: i32) -> (i32, i32) {
    %c0_i32 = arith.constant 0 : i32
    %c0_i32_0 = arith.constant 0 : i32
    return %arg0, %c0_i32 : i32, i32
  }
}

</mosaic_0001>

<bundles_post_ra>
// kernel: tpu_custom_call.1
= control target key start
LH: loop header
LB: loop body
LE: loop exit
PB: predicated region body
PF: predicated region fallthrough
CT: control target
= control target key end

     0   :  { %9 = vsyncpa [#allocation3], 0  ;;  %v768_v54 = vmov 1983009808   ;;  %v137_v56 = vlaneseq  ;;  %vm770_vm0 = vmmov 0   ;;  %vm412_vm1 = vcmask 261120   ;;  %s1141_s0 = inlined_call_operand.vmem [shape: f32[2,768], index: 0, kind: input, shape index: {}]   ;;  %s1142_s1 = inlined_call_operand.vmem [shape: f32[768,32], index: 1, kind: input, shape index: {}]   ;;  %s1143_s2 = inlined_call_operand.vmem [shape: f32[32,3], index: 2, kind: input, shape index: {}]   ;;  %s1144_s3 = inlined_call_operand.vmem [shape: f32[1,3], index: 3, kind: input, shape index: {}]   ;;  %s1145_s4 = inlined_call_operand.hbm [shape: f32[2,3], index: 4, kind: output, shape index: {}]  }
   0x1   :  { %v42_v0 = vld [vmem:[%s1142_s1 + $0x80] sm:$0xff]  ;;  %v43_v1 = vld [vmem:[%s1142_s1 + $0x88] sm:$0xff]  ;;  %v44_v12 = vld [vmem:[%s1142_s1 + $0x90] sm:$0xff]  ;;  %v135_v55 = vunpack.c.l.s4 %v768_v54  ;;  %vm486_vm2 = vcmask 23552  }
   0x2   :  { %v627_v2 = vpack.c.bf16 %v43_v1, %v42_v0  ;;  %v74_v3 = vld [vmem:[%s1142_s1 + $0x180] sm:$0xff]  ;;  %v75_v4 = vld [vmem:[%s1142_s1 + $0x188] sm:$0xff]  ;;  %v45_v13 = vld [vmem:[%s1142_s1 + $0x98] sm:$0xff] }
   0x3   :  { %v26_v5 = vld [vmem:[%s1142_s1] sm:$0xff]  ;;  %v659_v6 = vpack.c.bf16 %v75_v4, %v74_v3  ;;  %v27_v7 = vld [vmem:[%s1142_s1 + $0x8] sm:$0xff]  ;;  %v76_v14 = vld [vmem:[%s1142_s1 + $0x190] sm:$0xff]  ;;  %v631_v15 = vpack.c.bf16 %v45_v13, %v44_v12 }
   0x4   :  { %v58_v8 = vld [vmem:[%s1142_s1 + $0x100] sm:$0xff]  ;;  %v59_v9 = vld [vmem:[%s1142_s1 + $0x108] sm:$0xff]  ;;  %628 = vmatprep.subr.bf16.mxu0 %v627_v2  ;;  %v629_v10 = vpack.c.bf16 %v27_v7, %v26_v5  ;;  %v77_v16 = vld [vmem:[%s1142_s1 + $0x198] sm:$0xff]  ;;  %v138_v7 = vshrl.u32 %v137_v56, 7 }
   0x5   :  { %v661_v11 = vpack.c.bf16 %v59_v9, %v58_v8  ;;  %660 = vmatprep.subr.bf16.mxu1 %v659_v6  ;;  %v28_v17 = vld [vmem:[%s1142_s1 + $0x10] sm:$0xff]  ;;  %v29_v18 = vld [vmem:[%s1142_s1 + $0x18] sm:$0xff]  ;;  %v663_v19 = vpack.c.bf16 %v77_v16, %v76_v14  ;;  %v46_v23 = vld [vmem:[%s1142_s1 + $0xa0] sm:$0xff]  ;;  %v136_v6 = vunpack.c.0.s8 %v135_v55 }
   0x6   :  { %630 = vmatpush3.bf16.msra.mxu0 %v629_v10  ;;  %v633_v20 = vpack.c.bf16 %v29_v18, %v28_v17  ;;  %v60_v21 = vld [vmem:[%s1142_s1 + $0x110] sm:$0xff]  ;;  %v61_v22 = vld [vmem:[%s1142_s1 + $0x118] sm:$0xff]  ;;  %v47_v25 = vld [vmem:[%s1142_s1 + $0xa8] sm:$0xff] }
   0x7   :  { %662 = vmatpush3.bf16.msra.mxu1 %v661_v11  ;;  %632 = vmatprep.subr.bf16.mxu0 %v631_v15  ;;  %v665_v24 = vpack.c.bf16 %v61_v22, %v60_v21  ;;  %v78_v26 = vld [vmem:[%s1142_s1 + $0x1a0] sm:$0xff]  ;;  %v79_v27 = vld [vmem:[%s1142_s1 + $0x1a8] sm:$0xff]  ;;  %v635_v28 = vpack.c.bf16 %v47_v25, %v46_v23  ;;  %v48_v34 = vld [vmem:[%s1142_s1 + $0xb0] sm:$0xff]  ;;  %v980_v25 = vsub.s32 %v136_v6, %v138_v7 }
   0x8   :  { %664 = vmatprep.subr.bf16.mxu1 %v663_v19  ;;  %v667_v29 = vpack.c.bf16 %v79_v27, %v78_v26  ;;  %v30_v30 = vld [vmem:[%s1142_s1 + $0x20] sm:$0xff]  ;;  %v31_v31 = vld [vmem:[%s1142_s1 + $0x28] sm:$0xff]  ;;  %v49_v35 = vld [vmem:[%s1142_s1 + $0xb8] sm:$0xff] }
   0x9   :  { %v62_v32 = vld [vmem:[%s1142_s1 + $0x120] sm:$0xff]  ;;  %v63_v33 = vld [vmem:[%s1142_s1 + $0x128] sm:$0xff]  ;;  %v637_v36 = vpack.c.bf16 %v31_v31, %v30_v30  ;;  %v80_v38 = vld [vmem:[%s1142_s1 + $0x1b0] sm:$0xff]  ;;  %v639_v41 = vpack.c.bf16 %v49_v35, %v48_v34 }
   0xa   :  { %634 = vmatpush3.bf16.msra.mxu0 %v633_v20  ;;  %v669_v37 = vpack.c.bf16 %v63_v33, %v62_v32  ;;  %v81_v39 = vld [vmem:[%s1142_s1 + $0x1b8] sm:$0xff]  ;;  %v32_v40 = vld [vmem:[%s1142_s1 + $0x30] sm:$0xff]  ;;  %v50_v46 = vld [vmem:[%s1142_s1 + $0xc0] sm:$0xff] }
   0xb   :  { %666 = vmatpush3.bf16.msra.mxu1 %v665_v24  ;;  %636 = vmatprep.subr.bf16.mxu0 %v635_v28  ;;  %v671_v42 = vpack.c.bf16 %v81_v39, %v80_v38  ;;  %v33_v43 = vld [vmem:[%s1142_s1 + $0x38] sm:$0xff]  ;;  %v64_v44 = vld [vmem:[%s1142_s1 + $0x130] sm:$0xff]  ;;  %v51_v47 = vld [vmem:[%s1142_s1 + $0xc8] sm:$0xff] }
   0xc   :  { %668 = vmatprep.subr.bf16.mxu1 %v667_v29  ;;  %v65_v45 = vld [vmem:[%s1142_s1 + $0x138] sm:$0xff]  ;;  %v82_v48 = vld [vmem:[%s1142_s1 + $0x1c0] sm:$0xff]  ;;  %v83_v49 = vld [vmem:[%s1142_s1 + $0x1c8] sm:$0xff]  ;;  %v641_v50 = vpack.c.bf16 %v33_v43, %v32_v40  ;;  %v643_v57 = vpack.c.bf16 %v51_v47, %v50_v46 }
   0xd   :  { %v673_v51 = vpack.c.bf16 %v65_v45, %v64_v44  ;;  %v34_v52 = vld [vmem:[%s1142_s1 + $0x40] sm:$0xff]  ;;  %v35_v53 = vld [vmem:[%s1142_s1 + $0x48] sm:$0xff]  ;;  %v675_v58 = vpack.c.bf16 %v83_v49, %v82_v48  ;;  %v52_v61 = vld [vmem:[%s1142_s1 + $0xd0] sm:$0xff] }
   0xe   :  { %638 = vmatpush3.bf16.msra.mxu0 %v637_v36  ;;  %v66_v59 = vld [vmem:[%s1142_s1 + $0x140] sm:$0xff]  ;;  %v67_v60 = vld [vmem:[%s1142_s1 + $0x148] sm:$0xff]  ;;  %v53_v62 = vld [vmem:[%s1142_s1 + $0xd8] sm:$0xff]  ;;  %v645_v1 = vpack.c.bf16 %v35_v53, %v34_v52 }
   0xf   :  { %670 = vmatpush3.bf16.msra.mxu1 %v669_v37  ;;  %640 = vmatprep.subr.bf16.mxu0 %v639_v41  ;;  %v84_v63 = vld [vmem:[%s1142_s1 + $0x1d0] sm:$0xff]  ;;  %v85_v0 = vld [vmem:[%s1142_s1 + $0x1d8] sm:$0xff]  ;;  %v677_v2 = vpack.c.bf16 %v67_v60, %v66_v59  ;;  %v647_v8 = vpack.c.bf16 %v53_v62, %v52_v61  ;;  %v54_v11 = vld [vmem:[%s1142_s1 + $0xe0] sm:$0xff] }
  0x10   :  { %672 = vmatprep.subr.bf16.mxu1 %v671_v42  ;;  %v36_v3 = vld [vmem:[%s1142_s1 + $0x50] sm:$0xff]  ;;  %v37_v4 = vld [vmem:[%s1142_s1 + $0x58] sm:$0xff]  ;;  %v679_v9 = vpack.c.bf16 %v85_v0, %v84_v63  ;;  %v55_v12 = vld [vmem:[%s1142_s1 + $0xe8] sm:$0xff] }
  0x11   :  { %v68_v5 = vld [vmem:[%s1142_s1 + $0x150] sm:$0xff]  ;;  %v69_v10 = vld [vmem:[%s1142_s1 + $0x158] sm:$0xff]  ;;  %v86_v13 = vld [vmem:[%s1142_s1 + $0x1e0] sm:$0xff]  ;;  %v649_v19 = vpack.c.bf16 %v37_v4, %v36_v3  ;;  %v651_v26 = vpack.c.bf16 %v55_v12, %v54_v11 }
  0x12   :  { %642 = vmatpush3.bf16.msra.mxu0 %v641_v50  ;;  %v87_v14 = vld [vmem:[%s1142_s1 + $0x1e8] sm:$0xff]  ;;  %v38_v15 = vld [vmem:[%s1142_s1 + $0x60] sm:$0xff]  ;;  %v681_v20 = vpack.c.bf16 %v69_v10, %v68_v5  ;;  %v56_v21 = vld [vmem:[%s1142_s1 + $0xf0] sm:$0xff] }
  0x13   :  { %674 = vmatpush3.bf16.msra.mxu1 %v673_v51  ;;  %644 = vmatprep.subr.bf16.mxu0 %v643_v57  ;;  %v39_v16 = vld [vmem:[%s1142_s1 + $0x68] sm:$0xff]  ;;  %v70_v17 = vld [vmem:[%s1142_s1 + $0x160] sm:$0xff]  ;;  %v57_v22 = vld [vmem:[%s1142_s1 + $0xf8] sm:$0xff]  ;;  %v683_v27 = vpack.c.bf16 %v87_v14, %v86_v13 }
  0x14   :  { %676 = vmatprep.subr.bf16.mxu1 %v675_v58  ;;  %v71_v18 = vld [vmem:[%s1142_s1 + $0x168] sm:$0xff]  ;;  %v88_v23 = vld [vmem:[%s1142_s1 + $0x1f0] sm:$0xff]  ;;  %v89_v24 = vld [vmem:[%s1142_s1 + $0x1f8] sm:$0xff]  ;;  %v653_v31 = vpack.c.bf16 %v39_v16, %v38_v15  ;;  %v655_v38 = vpack.c.bf16 %v57_v22, %v56_v21 }
  0x15   :  { %v736_v28 = vld [vmem:[%s1141_s0] ss:$12 sps:$4 sm:$0xff]   ;;  %v738_v29 = vld [vmem:[%s1141_s0 + $0x18] ss:$12 sps:$4 sm:$0xff]   ;;  %v685_v32 = vpack.c.bf16 %v71_v18, %v70_v17  ;;  %v741_v33 = vld [vmem:[%s1141_s0 + $0x1c] ss:$12 sps:$4 sm:$0xff]   ;;  %v687_v39 = vpack.c.bf16 %v89_v24, %v88_v23 }
  0x16   :  { %646 = vmatpush3.bf16.msra.mxu0 %v645_v1  ;;  %v740_v30 = vld [vmem:[%s1141_s0 + $0x4] ss:$12 sps:$4 sm:$0xff]   ;;  %v140_v35 = vrot.slane %v736_v28, %v980_v25  ;;  %v154_v36 = vrot.slane %v738_v29, %v980_v25  ;;  %v41_v40 = vld [vmem:[%s1142_s1 + $0x78] sm:$0xff]  ;;  %v161_v43 = vrot.slane %v741_v33, %v980_v25  ;;  %v107_v46 = vld [vmem:[%s1142_s1 + $0x288] sm:$0xff] }
  0x17   :  { %678 = vmatpush3.bf16.msra.mxu1 %v677_v2  ;;  %648 = vmatprep.subr.bf16.mxu0 %v647_v8  ;;  %v40_v34 = vld [vmem:[%s1142_s1 + $0x70] sm:$0xff]  ;;  %v147_v37 = vrot.slane %v740_v30, %v980_v25  ;;  %v73_v42 = vld [vmem:[%s1142_s1 + $0x178] sm:$0xff]  ;;  %v106_v45 = vld [vmem:[%s1142_s1 + $0x280] sm:$0xff] }
  0x18   :  { %680 = vmatprep.subr.bf16.mxu1 %v679_v9  ;;  %v72_v41 = vld [vmem:[%s1142_s1 + $0x170] sm:$0xff]  ;;  %v163_v44 = vcombine.high %v140_v35, %v154_v36  ;;  %v657_v48 = vpack.c.bf16 %v41_v40, %v40_v34  ;;  %v691_v50 = vpack.c.bf16 %v107_v46, %v106_v45  ;;  %v90_v51 = vld [vmem:[%s1142_s1 + $0x200] sm:$0xff]  ;;  %v91_v52 = vld [vmem:[%s1142_s1 + $0x208] sm:$0xff]  ;;  %v162_v55 = vcombine.low %v140_v35, %v154_v36 }
  0x19   :  { %v165_v47 = vcombine.high %v147_v37, %v161_v43  ;;  %v689_v49 = vpack.c.bf16 %v73_v42, %v72_v41  ;;  %v108_v53 = vld [vmem:[%s1142_s1 + $0x290] sm:$0xff]  ;;  %v109_v54 = vld [vmem:[%s1142_s1 + $0x298] sm:$0xff]  ;;  %v164_v56 = vcombine.low %v147_v37, %v161_v43  ;;  %v693_v57 = vpack.c.bf16 %v91_v52, %v90_v51  ;;  %v110_v61 = vld [vmem:[%s1142_s1 + $0x2a0] sm:$0xff] }
  0x1a   :  { %650 = vmatpush3.bf16.msra.mxu0 %v649_v19  ;;  %254 = vmatprep.mubr.f32.mxu0 %v163_v44  ;;  %v92_v58 = vld [vmem:[%s1142_s1 + $0x210] sm:$0xff]  ;;  %v695_v59 = vpack.c.bf16 %v109_v54, %v108_v53  ;;  %v93_v60 = vld [vmem:[%s1142_s1 + $0x218] sm:$0xff]  ;;  %v111_v62 = vld [vmem:[%s1142_s1 + $0x2a8] sm:$0xff]  ;;  %v769_v43 = vmov 0.0|0.0  }
  0x1b   :  { %682 = vmatpush3.bf16.msra.mxu1 %v681_v20  ;;  %652 = vmatprep.subr.bf16.mxu0 %v651_v26  ;;  %v742_v63 = vld [vmem:[%s1141_s0 + $0x8] ss:$12 sps:$4 sm:$0xff]   ;;  %v743_v0 = vld [vmem:[%s1141_s0 + $0x20] ss:$12 sps:$4 sm:$0xff]   ;;  %v697_v1 = vpack.c.bf16 %v93_v60, %v92_v58  ;;  %v699_v2 = vpack.c.bf16 %v111_v62, %v110_v61  ;;  %v113_v8 = vld [vmem:[%s1142_s1 + $0x2b8] sm:$0xff] }
  0x1c   :  { %684 = vmatprep.subr.bf16.mxu1 %v683_v27  ;;  %324 = vmatprep.mubr.f32.mxu1 %v165_v47  ;;  %v94_v3 = vld [vmem:[%s1142_s1 + $0x220] sm:$0xff]  ;;  %v95_v4 = vld [vmem:[%s1142_s1 + $0x228] sm:$0xff]  ;;  %v174_v5 = vrot.slane %v742_v63, %v980_v25  ;;  %v181_v6 = vrot.slane %v743_v0, %v980_v25  ;;  %v112_v7 = vld [vmem:[%s1142_s1 + $0x2b0] sm:$0xff]  ;;  %v771_v47 = vmov 0.0  }
  0x1d   :  { %v701_v10 = vpack.c.bf16 %v95_v4, %v94_v3  ;;  %v703_v11 = vpack.c.bf16 %v113_v8, %v112_v7  ;;  %v96_v12 = vld [vmem:[%s1142_s1 + $0x230] sm:$0xff]  ;;  %v97_v13 = vld [vmem:[%s1142_s1 + $0x238] sm:$0xff]  ;;  %v114_v14 = vld [vmem:[%s1142_s1 + $0x2c0] sm:$0xff] }
  0x1e   :  { %654 = vmatpush3.bf16.msra.mxu0 %v653_v31  ;;  %v183_v9 = vcombine.high %v174_v5, %v181_v6  ;;  %v115_v15 = vld [vmem:[%s1142_s1 + $0x2c8] sm:$0xff]  ;;  %v705_v16 = vpack.c.bf16 %v97_v13, %v96_v12  ;;  %v98_v18 = vld [vmem:[%s1142_s1 + $0x240] sm:$0xff]  ;;  %v116_v20 = vld [vmem:[%s1142_s1 + $0x2d0] sm:$0xff] }
  0x1f   :  { %686 = vmatpush3.bf16.msra.mxu1 %v685_v32  ;;  %656 = vmatprep.subr.bf16.mxu0 %v655_v38  ;;  %v707_v17 = vpack.c.bf16 %v115_v15, %v114_v14  ;;  %v99_v19 = vld [vmem:[%s1142_s1 + $0x248] sm:$0xff]  ;;  %v117_v21 = vld [vmem:[%s1142_s1 + $0x2d8] sm:$0xff]  ;;  %v100_v24 = vld [vmem:[%s1142_s1 + $0x250] sm:$0xff] }
  0x20   :  { %688 = vmatprep.subr.bf16.mxu1 %v687_v39  ;;  %v709_v22 = vpack.c.bf16 %v99_v19, %v98_v18  ;;  %v711_v23 = vpack.c.bf16 %v117_v21, %v116_v20  ;;  %v101_v25 = vld [vmem:[%s1142_s1 + $0x258] sm:$0xff]  ;;  %v118_v26 = vld [vmem:[%s1142_s1 + $0x2e0] sm:$0xff]  ;;  %v119_v27 = vld [vmem:[%s1142_s1 + $0x2e8] sm:$0xff]  ;;  %v182_v39 = vcombine.low %v174_v5, %v181_v6 }
  0x21   :  { %v713_v28 = vpack.c.bf16 %v101_v25, %v100_v24  ;;  %v715_v29 = vpack.c.bf16 %v119_v27, %v118_v26  ;;  %v102_v30 = vld [vmem:[%s1142_s1 + $0x260] sm:$0xff]  ;;  %v103_v31 = vld [vmem:[%s1142_s1 + $0x268] sm:$0xff]  ;;  %v120_v32 = vld [vmem:[%s1142_s1 + $0x2f0] sm:$0xff] }
  0x22   :  { %658 = vmatpush3.bf16.msra.mxu0 %v657_v48  ;;  %v121_v33 = vld [vmem:[%s1142_s1 + $0x2f8] sm:$0xff]  ;;  %v717_v34 = vpack.c.bf16 %v103_v31, %v102_v30  ;;  %v104_v36 = vld [vmem:[%s1142_s1 + $0x270] sm:$0xff]  ;;  %v401_v40 = vld [vmem:[%s1143_s2] sm:$0xff] }
  0x23   :  { %690 = vmatpush3.bf16.msra.mxu1 %v689_v49  ;;  %692 = vmatprep.subr.bf16.mxu0 %v691_v50  ;;  %v719_v35 = vpack.c.bf16 %v121_v33, %v120_v32  ;;  %v105_v37 = vld [vmem:[%s1142_s1 + $0x278] sm:$0xff]  ;;  %v402_v41 = vld [vmem:[%s1143_s2 + $0x8] sm:$0xff]  ;;  %v403_v44 = vld [vmem:[%s1143_s2 + $0x10] sm:$0xff] }
  0x24   :  { %v721_v38 = vpack.c.bf16 %v105_v37, %v104_v36  ;;  %v724_v42 = vpack.c.bf16 %v402_v41, %v401_v40  ;;  %723 = vmatprep.subr.bf16.mxu1 %v769_v43  ;;  %v404_v45 = vld [vmem:[%s1143_s2 + $0x18] sm:$0xff]  ;;  %v504_v60 = vld [vmem:[%s1144_s3] ss:$0 sm:$0xff] }
  0x25   :  { %255 = vmatmul.mubr.f32.vlgmr.msra.gmra.mrb[0].mxu0 %v162_v55  ;;  %v727_v46 = vpack.c.bf16 %v404_v45, %v403_v44 }
  0x26   :  { %325 = vmatmul.mubr.f32.vlgmr.msra.gmra.mrb[0].mxu1 %v164_v56  ;;  %694 = vmatpush3.bf16.msra.mxu0 %v693_v57 }
  0x27   :  { %696 = vmatprep.subr.bf16.mxu0 %v695_v59  ;;  %394 = vmatprep.mubr.f32.mxu0 %v183_v9 }
  0x28   :  { %725 = vmatpush3.bf16.msra.mxu1 %v724_v42  ;;  %624 = vmatprep.mubr.msk.f32.mxu1 %vm770_vm0, %v771_v47 }
  0x29   :  { %726 = vmatprep.subr.bf16.mxu1 %v769_v43 }
  0x2a   :  { %698 = vmatpush3.bf16.msra.mxu0 %v697_v1 }
  0x2b   :  { %700 = vmatprep.subr.bf16.mxu0 %v699_v2 }
  0x2c   :  { %728 = vmatpush3.bf16.msra.mxu1 %v727_v46 }
  0x2e   :  { %702 = vmatpush3.bf16.msra.mxu0 %v701_v10 }
  0x2f   :  { %704 = vmatprep.subr.bf16.mxu0 %v703_v11 }
  0x32   :  { %706 = vmatpush3.bf16.msra.mxu0 %v705_v16 }
  0x33   :  { %708 = vmatprep.subr.bf16.mxu0 %v707_v17 }
  0x36   :  { %710 = vmatpush3.bf16.msra.mxu0 %v709_v22 }
  0x37   :  { %712 = vmatprep.subr.bf16.mxu0 %v711_v23 }
  0x3a   :  { %714 = vmatpush3.bf16.msra.mxu0 %v713_v28 }
  0x3b   :  { %716 = vmatprep.subr.bf16.mxu0 %v715_v29 }
  0x3e   :  { %718 = vmatpush3.bf16.msra.mxu0 %v717_v34 }
  0x3f   :  { %720 = vmatprep.subr.bf16.mxu0 %v719_v35 }
  0x42   :  { %722 = vmatpush3.bf16.msra.mxu0 %v721_v38 }
  0x45   :  { %395 = vmatmul.mubr.f32.vlgmr.msra.gmra.mrb[2].mxu0 %v182_v39 }
  0xf8   :  { %v538_v48 = vpop.f32.mrb[0].mxu0 }
  0xf9   :  { %v573_v49 = vpop.f32.mrb[0].mxu1  ;;  %v539_v50 = vpop.f32.mrb[1].mxu0 }
  0xfa   :  { %v574_v51 = vpop.f32.mrb[1].mxu1  ;;  %v540_v52 = vadd.f32 %v539_v50, %v538_v48 }
  0xfb   :  { %v575_v53 = vadd.f32 %v574_v51, %v573_v49 }
  0xfd   :  { %v327_v54 = vadd.f32 %v575_v53, %v540_v52 }
 0x118   :  { %v608_v55 = vpop.f32.mrb[2].mxu0 }
 0x119   :  { %v609_v56 = vpop.f32.mrb[3].mxu0 }
 0x11a   :  { %v610_v57 = vadd.f32 %v609_v56, %v608_v55 }
 0x11c   :  { %v397_v58 = vadd.f32 %v610_v57, %v327_v54 }
 0x11e   :  { %v400_v59 = vmax.f32 %v397_v58, 0.0 }
 0x120   :  { %625 = vmatmul.mubr.msk.f32.vlgmr.msra.gmra.mrb[2].mxu1 %vm412_vm1, %v400_v59 }
 0x1f3   :  { %v482_v61 = vpop.f32.mrb[2].mxu1 }
 0x1f4   :  { %v483_v62 = vadd.f32 %v504_v60, %v482_v61  ;;  %v626_v63 = vpop.f32.mrb[3].mxu1 }
 0x1f6   :  { %487 = vst.msk [vmem:[#allocation2] sm:$0xff] %vm486_vm2, %v483_v62 }
 0x1f7   :  { %492 = vsyncadd [#allocation3], 96  ;;  %s772_s17 = smov [#allocation2]  }
 0x1f8   :  { %s493_s18 = sshll.u32 %s772_s17, 4  ;;  %s494_s18 = int_to_ptr.vmem [resolvable:$true] %s493_s18 }
 0x1f9   :  { %s744_s19 = scalar_lea.vmem %s494_s18, 32  ;;  %s748_s20 = scalar_lea.vmem %s494_s18, 128 }
 0x1fa   :  { %p745_p0 = scmp.ne.s32.totalorder %s494_s18, %s744_s19  ;;  %p749_p1 = scmp.lt.s32.totalorder %s494_s18, %s494_s18 }
 0x1fb   :  { %p750_p2 = scmp.lt.s32.totalorder %s748_s20, %s744_s19 }
 0x1fd   :  { %p751_p3 = por %p750_p2, %p749_p1 }
 0x1ff   :  { %p752_p4 = pnand %p751_p3, %p745_p0 }
 0x201   :  { %755 = shalt.err (!%p752_p4)
}
 0x202   :  { %s756_s3 = scalar_lea.hbm %s1145_s4, 32 }
 0x203   :  { %p757_p5 = scmp.ne.s32.totalorder %s1145_s4, %s756_s3  ;;  %p760_p6 = scmp.lt.u32.totalorder %s756_s3, %s1145_s4 }
 0x205   :  { %p762_p7 = pnand %p760_p6, %p757_p5 }
 0x207   :  { %765 = shalt.err (!%p762_p7)
}
 0x208   :  { %s773_s26 = smov 32   ;;  %s774_s27 = smov 2  }
 0x209   :  { %499 = dma.vmem_to_hbm [thread:$0]  %s494_s18, 32, %s1145_s4, [#allocation3], %s773_s26, %s773_s26, %s774_s27  }
 0x20a   :  { %766 = dma.done.wait [#allocation3], 128  }
 0x20b   :  { %767 = vsyncadd [#allocation3], 4294967168 }
 0x20c   :  { %503 = vsyncpa [#allocation3], 1 }

</bundles_post_ra>
